<compile_context>
chip_gen: v7x
topology: tpu7x:2x2x1
jax: 0.10.0
libtpu: 0.0.40
codegen_flags: <defaults>
</compile_context>

<pallas_src>
import numpy as np

import jax
import jax.numpy as jnp
from jax import lax
from jax.experimental import pallas as pl
from jax.experimental.pallas import tpu as pltpu


# ----------------------------------------------------------------------------
# Fused kernel: conv1 -> conv2 -> flatten -> fc1 -> fc2 -> sigmoid (4 MXU dots)
# ----------------------------------------------------------------------------
def _make_fused_kernel(N, OC2, n_sp):
    f32 = jnp.float32

    def kernel(x2_ref, m1_ref, w1w_ref, b1w_ref, w2t_ref, b2_ref,
               fw1_ref, fb1_ref, fw2_ref, fb2_ref, o_ref, flat_ref):
        # conv1 (+bias, ReLU, halo mask): one dot that directly produces
        # conv2's im2col matrix.  rows = (oh2, ow2, n), cols = (i2, j2, c1).
        xcol2 = jnp.dot(x2_ref[...], w1w_ref[...], preferred_element_type=f32)
        xcol2 = jnp.maximum(xcol2 + b1w_ref[...], 0.0) * m1_ref[...]

        # conv2 (+bias, ReLU): one dot.  rows = (spatial s, batch n).
        feat = jnp.dot(xcol2, w2t_ref[...], preferred_element_type=f32)
        feat = jnp.maximum(feat + b2_ref[...], 0.0)          # (n_sp*N, OC2)

        # Flatten (s, n, c) -> (n, s*OC2 + c) via a small VMEM scratch:
        # n_sp independent (N, OC2) stores, then one (N, n_sp*OC2) load.
        for s in range(n_sp):
            flat_ref[:, s * OC2:(s + 1) * OC2] = feat[s * N:(s + 1) * N, :]
        xflat = flat_ref[...]                                # (N, n_sp*OC2)

        # fc head: Linear -> ReLU -> Linear -> Sigmoid.
        hidden = jnp.dot(xflat, fw1_ref[...], preferred_element_type=f32)
        hidden = jnp.maximum(hidden + fb1_ref[...], 0.0)     # (N, HID)
        y = jnp.dot(hidden, fw2_ref[...], preferred_element_type=f32) + fb2_ref[...]
        o_ref[...] = jax.nn.sigmoid(y)                       # (N, OUT)

    return kernel


# ----------------------------------------------------------------------------
# Forward pass (single pallas_call)
# ----------------------------------------------------------------------------
def ba_detection_net_forward(packed, x):
    N, C0, H, W = x.shape
    assert H % 4 == 0 and W % 4 == 0
    OH1, OW1 = H // 2, W // 2                  # conv1 output spatial size
    OH2, OW2 = H // 4, W // 4                  # conv2 output spatial size
    n_sp = OH2 * OW2
    KP = 7 * 7 * C0
    OC1 = packed["b1w"].shape[1] // 9
    OC2 = packed["w2t"].shape[1]
    OUT = packed["fc_w2"].shape[1]

    # ---- glue: 7x7 receptive-field patch of every conv2 output position ----
    #   x2[(oh2, ow2, n), (dh, dw, c0)] = x_pad3[n, c0, 4*oh2 + dh, 4*ow2 + dw]
    xpad = jnp.pad(x, ((0, 0), (0, 0), (3, 0), (3, 0)))      # pad 3 top/left
    blocks = []
    for oh2 in range(OH2):
        row = []
        for ow2 in range(OW2):
            p = lax.slice(xpad, (0, 0, 4 * oh2, 4 * ow2),
                          (N, C0, 4 * oh2 + 7, 4 * ow2 + 7))  # (N, C0, 7, 7)
            row.append(p.transpose(0, 2, 3, 1).reshape(N, KP))
        blocks.append(jnp.stack(row, axis=0))                 # (OW2, N, KP)
    x2 = jnp.stack(blocks, axis=0).reshape(n_sp * N, KP)

    # ---- static halo mask: zero conv1 taps that fall outside its output ----
    vh = np.zeros((OH2, 3), np.float32)
    vw = np.zeros((OW2, 3), np.float32)
    for o in range(OH2):
        for i in range(3):
            vh[o, i] = 1.0 if 0 <= 2 * o + i - 1 < OH1 else 0.0
    for o in range(OW2):
        for j in range(3):
            vw[o, j] = 1.0 if 0 <= 2 * o + j - 1 < OW1 else 0.0
    m1 = vh[:, None, :, None] * vw[None, :, None, :]          # (OH2,OW2,3,3)
    m1 = np.broadcast_to(m1[:, :, None, :, :, None],
                         (OH2, OW2, N, 3, 3, OC1)).reshape(n_sp * N, 9 * OC1)
    m1 = jnp.asarray(m1)

    kernel = _make_fused_kernel(N, OC2, n_sp)
    args = (x2, m1, packed["w1w"], packed["b1w"], packed["w2t"], packed["b2"],
            packed["fc_w1"], packed["fc_b1"], packed["fc_w2"], packed["fc_b2"])
    in_specs = [pl.BlockSpec(a.shape, lambda i: (0, 0)) for a in args]

    return pl.pallas_call(
        kernel,
        out_shape=jax.ShapeDtypeStruct((N, OUT), jnp.float32),
        grid=(1,),
        in_specs=in_specs,
        out_specs=pl.BlockSpec((N, OUT), lambda i: (0, 0)),
        scratch_shapes=[pltpu.VMEM((N, n_sp * OC2), jnp.float32)],
        compiler_params=pltpu.CompilerParams(
            dimension_semantics=("arbitrary",)),
    )(*args)


# ----------------------------------------------------------------------------
# Parameters (PyTorch layout) + one-time packing into kernel layout
# ----------------------------------------------------------------------------
def init_params(key, in_channels=4, enc_channels=(8, 16),
                in_hw=(16, 16), hidden_size=32, output_size=1):
    ks = jax.random.split(key, 6)
    c_prev = in_channels
    params = {"enc": []}
    i = 0
    for c_out in enc_channels:
        scale = 1.0 / jnp.sqrt(c_prev * 9.0)
        w = jax.random.normal(ks[i], (c_out, c_prev, 3, 3), jnp.float32) * scale
        b = jnp.zeros((c_out,), jnp.float32)
        params["enc"].append((w, b))
        c_prev = c_out
        i += 1
    oh = in_hw[0] // (2 ** len(enc_channels))
    ow = in_hw[1] // (2 ** len(enc_channels))
    feat = c_prev * oh * ow
    params["fc_w1"] = (jax.random.normal(ks[i], (feat, hidden_size), jnp.float32)
                       / jnp.sqrt(feat * 1.0))
    params["fc_b1"] = jnp.zeros((hidden_size,), jnp.float32)
    params["fc_w2"] = (jax.random.normal(ks[i + 1], (hidden_size, output_size),
                                         jnp.float32) / jnp.sqrt(hidden_size * 1.0))
    params["fc_b2"] = jnp.zeros((output_size,), jnp.float32)
    return params


def pack_params(params):
    """One-time repack (not on the hot path) of PyTorch-layout params."""
    assert len(params["enc"]) == 2
    (w1c, b1c), (w2c, b2c) = params["enc"]
    w1 = np.asarray(w1c)
    b1 = np.asarray(b1c)
    w2 = np.asarray(w2c)
    b2 = np.asarray(b2c)
    OC1, C0 = w1.shape[0], w1.shape[1]
    OC2, C1 = w2.shape[0], w2.shape[1]
    assert C1 == OC1
    HID = params["fc_w1"].shape[1]
    OUT = params["fc_w2"].shape[1]
    n_sp = params["fc_w1"].shape[0] // OC2          # conv2 spatial positions

    # conv1 weights spread over the 7x7 conv2-receptive-field patch,
    # one column block per conv2 tap:
    #   w1w[(dh, dw, c0), (i2, j2, c1)] = w1[c1, c0, i1, j1]
    #   with dh = 2*i2 + i1,  dw = 2*j2 + j1.
    w1w = np.zeros((7, 7, C0, 3, 3, OC1), np.float32)
    for i2 in range(3):
        for i1 in range(3):
            for j2 in range(3):
                for j1 in range(3):
                    w1w[2 * i2 + i1, 2 * j2 + j1, :, i2, j2, :] = \
                        w1[:, :, i1, j1].transpose(1, 0)
    w1w = w1w.reshape(7 * 7 * C0, 9 * OC1)
    b1w = np.tile(b1, 9).reshape(1, 9 * OC1)        # columns ordered (tap, c1)

    # conv2 weights -> (72, OC2) with rows ordered (i2, j2, c1)
    w2t = w2.transpose(2, 3, 1, 0).reshape(9 * C1, OC2)

    # fc_w1 rows permuted from torch NCHW flatten (c*HW + s) to (s*C + c)
    fc_w1 = (np.asarray(params["fc_w1"]).reshape(OC2, n_sp, HID)
             .transpose(1, 0, 2).reshape(n_sp * OC2, HID))

    return {
        "w1w": jnp.asarray(w1w), "b1w": jnp.asarray(b1w),
        "w2t": jnp.asarray(w2t), "b2": jnp.asarray(b2.reshape(1, OC2)),
        "fc_w1": jnp.asarray(fc_w1),
        "fc_b1": jnp.asarray(np.asarray(params["fc_b1"]).reshape(1, HID)),
        "fc_w2": jnp.asarray(params["fc_w2"]),
        "fc_b2": jnp.asarray(np.asarray(params["fc_b2"]).reshape(1, OUT)),
    }


# ----------------------------------------------------------------------------
# Pure-JAX reference (for correctness check only)
# ----------------------------------------------------------------------------
def _reference_forward(params, x):
    h = x
    for (w, b) in params["enc"]:
        h = lax.conv_general_dilated(h, w, window_strides=(2, 2),
                                     padding=((1, 1), (1, 1)),
                                     dimension_numbers=("NCHW", "OIHW", "NCHW"))
        h = jnp.maximum(h + b[None, :, None, None], 0.0)
    flat = h.reshape(h.shape[0], -1)
    hid = jnp.maximum(flat @ params["fc_w1"] + params["fc_b1"], 0.0)
    return jax.nn.sigmoid(hid @ params["fc_w2"] + params["fc_b2"])


if __name__ == "__main__":
    key = jax.random.PRNGKey(0)
    pkey, xkey = jax.random.split(key)
    params = init_params(pkey, in_channels=4, enc_channels=(8, 16),
                         in_hw=(16, 16), hidden_size=32, output_size=1)
    packed = pack_params(params)                      # one-time repack
    x = jax.random.normal(xkey, (2, 4, 16, 16), jnp.float32)   # NCHW

    fwd = jax.jit(ba_detection_net_forward)
    out = jax.block_until_ready(fwd(packed, x))

    assert out.shape == (2, 1)
    ref = _reference_forward(params, x)
    assert jnp.allclose(out, ref, atol=1e-4, rtol=1e-4), (out, ref)
    assert bool(jnp.all((out >= 0.0) & (out <= 1.0)))
    print("KERNEL_OK")
</pallas_src>

<mosaic_0001>
module attributes {stable_mosaic.version = 11 : i64} {
  func.func @kernel(%arg0: i32, %arg1: memref<32x196xf32, #tpu.memory_space<vmem>>, %arg2: memref<32x72xf32, #tpu.memory_space<vmem>>, %arg3: memref<196x72xf32, #tpu.memory_space<vmem>>, %arg4: memref<1x72xf32, #tpu.memory_space<vmem>>, %arg5: memref<72x16xf32, #tpu.memory_space<vmem>>, %arg6: memref<1x16xf32, #tpu.memory_space<vmem>>, %arg7: memref<256x32xf32, #tpu.memory_space<vmem>>, %arg8: memref<1x32xf32, #tpu.memory_space<vmem>>, %arg9: memref<32x1xf32, #tpu.memory_space<vmem>>, %arg10: memref<1x1xf32, #tpu.memory_space<vmem>>, %arg11: memref<2x1xf32, #tpu.memory_space<vmem>>, %arg12: memref<2x256xf32, #tpu.memory_space<vmem>>) attributes {dimension_semantics = [#tpu.dimension_semantics<arbitrary>], iteration_bounds = array<i64: 1>, scalar_prefetch = 0 : i64, scratch_operands = 1 : i64, tpu.core_type = #tpu.core_type<tc>, window_params = [{pipeline_mode = #tpu.pipeline_mode<synchronous>, transform_indices = @transform_0, window_bounds = array<i64: 32, 196>}, {pipeline_mode = #tpu.pipeline_mode<synchronous>, transform_indices = @transform_1, window_bounds = array<i64: 32, 72>}, {pipeline_mode = #tpu.pipeline_mode<synchronous>, transform_indices = @transform_2, window_bounds = array<i64: 196, 72>}, {pipeline_mode = #tpu.pipeline_mode<synchronous>, transform_indices = @transform_3, window_bounds = array<i64: 1, 72>}, {pipeline_mode = #tpu.pipeline_mode<synchronous>, transform_indices = @transform_4, window_bounds = array<i64: 72, 16>}, {pipeline_mode = #tpu.pipeline_mode<synchronous>, transform_indices = @transform_5, window_bounds = array<i64: 1, 16>}, {pipeline_mode = #tpu.pipeline_mode<synchronous>, transform_indices = @transform_6, window_bounds = array<i64: 256, 32>}, {pipeline_mode = #tpu.pipeline_mode<synchronous>, transform_indices = @transform_7, window_bounds = array<i64: 1, 32>}, {pipeline_mode = #tpu.pipeline_mode<synchronous>, transform_indices = @transform_8, window_bounds = array<i64: 32, 1>}, {pipeline_mode = #tpu.pipeline_mode<synchronous>, transform_indices = @transform_9, window_bounds = array<i64: 1, 1>}, {pipeline_mode = #tpu.pipeline_mode<synchronous>, transform_indices = @transform_10, window_bounds = array<i64: 2, 1>}]} {
    %c0 = arith.constant 0 : index
    %c0_0 = arith.constant 0 : index
    %0 = vector.load %arg1[%c0, %c0_0] : memref<32x196xf32, #tpu.memory_space<vmem>>, vector<32x196xf32>
    %c0_1 = arith.constant 0 : index
    %c0_2 = arith.constant 0 : index
    %1 = vector.load %arg3[%c0_1, %c0_2] : memref<196x72xf32, #tpu.memory_space<vmem>>, vector<196x72xf32>
    %cst = arith.constant dense<0.000000e+00> : vector<32x72xf32>
    %2 = tpu.matmul %0, %1, %cst {dimension_numbers = #tpu.dot_dimension_numbers<[1], [0], [0], [1], [0, 0, 1, 1], [], []>} : vector<32x196xf32>, vector<196x72xf32>, vector<32x72xf32> -> vector<32x72xf32>
    %c0_3 = arith.constant 0 : index
    %c0_4 = arith.constant 0 : index
    %3 = vector.load %arg4[%c0_3, %c0_4] : memref<1x72xf32, #tpu.memory_space<vmem>>, vector<1x72xf32>
    %4 = vector.broadcast %3 : vector<1x72xf32> to vector<32x72xf32>
    %5 = arith.addf %2, %4 : vector<32x72xf32>
    %cst_5 = arith.constant 0.000000e+00 : f32
    %6 = vector.broadcast %cst_5 : f32 to vector<32x72xf32>
    %7 = arith.maximumf %5, %6 : vector<32x72xf32>
    %c0_6 = arith.constant 0 : index
    %c0_7 = arith.constant 0 : index
    %8 = vector.load %arg2[%c0_6, %c0_7] : memref<32x72xf32, #tpu.memory_space<vmem>>, vector<32x72xf32>
    %9 = arith.mulf %7, %8 : vector<32x72xf32>
    %c0_8 = arith.constant 0 : index
    %c0_9 = arith.constant 0 : index
    %10 = vector.load %arg5[%c0_8, %c0_9] : memref<72x16xf32, #tpu.memory_space<vmem>>, vector<72x16xf32>
    %cst_10 = arith.constant dense<0.000000e+00> : vector<32x16xf32>
    %11 = tpu.matmul %9, %10, %cst_10 {dimension_numbers = #tpu.dot_dimension_numbers<[1], [0], [0], [1], [0, 0, 1, 1], [], []>} : vector<32x72xf32>, vector<72x16xf32>, vector<32x16xf32> -> vector<32x16xf32>
    %c0_11 = arith.constant 0 : index
    %c0_12 = arith.constant 0 : index
    %12 = vector.load %arg6[%c0_11, %c0_12] : memref<1x16xf32, #tpu.memory_space<vmem>>, vector<1x16xf32>
    %13 = vector.broadcast %12 : vector<1x16xf32> to vector<32x16xf32>
    %14 = arith.addf %11, %13 : vector<32x16xf32>
    %cst_13 = arith.constant 0.000000e+00 : f32
    %15 = vector.broadcast %cst_13 : f32 to vector<32x16xf32>
    %16 = arith.maximumf %14, %15 : vector<32x16xf32>
    %17 = vector.extract_strided_slice %16 {offsets = [0, 0], sizes = [2, 16], strides = [1, 1]} : vector<32x16xf32> to vector<2x16xf32>
    %c0_14 = arith.constant 0 : index
    %c0_15 = arith.constant 0 : index
    %18 = vector.load %arg12[%c0_14, %c0_15] : memref<2x256xf32, #tpu.memory_space<vmem>>, vector<2x16xf32>
    tpu.vector_store %arg12[%c0_14, %c0_15], %17 {strides = array<i32>} : memref<2x256xf32, #tpu.memory_space<vmem>>, vector<2x16xf32>,
    %19 = vector.extract_strided_slice %16 {offsets = [2, 0], sizes = [2, 16], strides = [1, 1]} : vector<32x16xf32> to vector<2x16xf32>
    %c0_16 = arith.constant 0 : index
    %c16 = arith.constant 16 : index
    %20 = vector.load %arg12[%c0_16, %c16] : memref<2x256xf32, #tpu.memory_space<vmem>>, vector<2x16xf32>
    tpu.vector_store %arg12[%c0_16, %c16], %19 {strides = array<i32>} : memref<2x256xf32, #tpu.memory_space<vmem>>, vector<2x16xf32>,
    %21 = vector.extract_strided_slice %16 {offsets = [4, 0], sizes = [2, 16], strides = [1, 1]} : vector<32x16xf32> to vector<2x16xf32>
    %c0_17 = arith.constant 0 : index
    %c32 = arith.constant 32 : index
    %22 = vector.load %arg12[%c0_17, %c32] : memref<2x256xf32, #tpu.memory_space<vmem>>, vector<2x16xf32>
    tpu.vector_store %arg12[%c0_17, %c32], %21 {strides = array<i32>} : memref<2x256xf32, #tpu.memory_space<vmem>>, vector<2x16xf32>,
    %23 = vector.extract_strided_slice %16 {offsets = [6, 0], sizes = [2, 16], strides = [1, 1]} : vector<32x16xf32> to vector<2x16xf32>
    %c0_18 = arith.constant 0 : index
    %c48 = arith.constant 48 : index
    %24 = vector.load %arg12[%c0_18, %c48] : memref<2x256xf32, #tpu.memory_space<vmem>>, vector<2x16xf32>
    tpu.vector_store %arg12[%c0_18, %c48], %23 {strides = array<i32>} : memref<2x256xf32, #tpu.memory_space<vmem>>, vector<2x16xf32>,
    %25 = vector.extract_strided_slice %16 {offsets = [8, 0], sizes = [2, 16], strides = [1, 1]} : vector<32x16xf32> to vector<2x16xf32>
    %c0_19 = arith.constant 0 : index
    %c64 = arith.constant 64 : index
    %26 = vector.load %arg12[%c0_19, %c64] : memref<2x256xf32, #tpu.memory_space<vmem>>, vector<2x16xf32>
    tpu.vector_store %arg12[%c0_19, %c64], %25 {strides = array<i32>} : memref<2x256xf32, #tpu.memory_space<vmem>>, vector<2x16xf32>,
    %27 = vector.extract_strided_slice %16 {offsets = [10, 0], sizes = [2, 16], strides = [1, 1]} : vector<32x16xf32> to vector<2x16xf32>
    %c0_20 = arith.constant 0 : index
    %c80 = arith.constant 80 : index
    %28 = vector.load %arg12[%c0_20, %c80] : memref<2x256xf32, #tpu.memory_space<vmem>>, vector<2x16xf32>
    tpu.vector_store %arg12[%c0_20, %c80], %27 {strides = array<i32>} : memref<2x256xf32, #tpu.memory_space<vmem>>, vector<2x16xf32>,
    %29 = vector.extract_strided_slice %16 {offsets = [12, 0], sizes = [2, 16], strides = [1, 1]} : vector<32x16xf32> to vector<2x16xf32>
    %c0_21 = arith.constant 0 : index
    %c96 = arith.constant 96 : index
    %30 = vector.load %arg12[%c0_21, %c96] : memref<2x256xf32, #tpu.memory_space<vmem>>, vector<2x16xf32>
    tpu.vector_store %arg12[%c0_21, %c96], %29 {strides = array<i32>} : memref<2x256xf32, #tpu.memory_space<vmem>>, vector<2x16xf32>,
    %31 = vector.extract_strided_slice %16 {offsets = [14, 0], sizes = [2, 16], strides = [1, 1]} : vector<32x16xf32> to vector<2x16xf32>
    %c0_22 = arith.constant 0 : index
    %c112 = arith.constant 112 : index
    %32 = vector.load %arg12[%c0_22, %c112] : memref<2x256xf32, #tpu.memory_space<vmem>>, vector<2x16xf32>
    tpu.vector_store %arg12[%c0_22, %c112], %31 {strides = array<i32>} : memref<2x256xf32, #tpu.memory_space<vmem>>, vector<2x16xf32>,
    %33 = vector.extract_strided_slice %16 {offsets = [16, 0], sizes = [2, 16], strides = [1, 1]} : vector<32x16xf32> to vector<2x16xf32>
    %c0_23 = arith.constant 0 : index
    %c128 = arith.constant 128 : index
    %34 = vector.load %arg12[%c0_23, %c128] : memref<2x256xf32, #tpu.memory_space<vmem>>, vector<2x16xf32>
    tpu.vector_store %arg12[%c0_23, %c128], %33 {strides = array<i32>} : memref<2x256xf32, #tpu.memory_space<vmem>>, vector<2x16xf32>,
    %35 = vector.extract_strided_slice %16 {offsets = [18, 0], sizes = [2, 16], strides = [1, 1]} : vector<32x16xf32> to vector<2x16xf32>
    %c0_24 = arith.constant 0 : index
    %c144 = arith.constant 144 : index
    %36 = vector.load %arg12[%c0_24, %c144] : memref<2x256xf32, #tpu.memory_space<vmem>>, vector<2x16xf32>
    tpu.vector_store %arg12[%c0_24, %c144], %35 {strides = array<i32>} : memref<2x256xf32, #tpu.memory_space<vmem>>, vector<2x16xf32>,
    %37 = vector.extract_strided_slice %16 {offsets = [20, 0], sizes = [2, 16], strides = [1, 1]} : vector<32x16xf32> to vector<2x16xf32>
    %c0_25 = arith.constant 0 : index
    %c160 = arith.constant 160 : index
    %38 = vector.load %arg12[%c0_25, %c160] : memref<2x256xf32, #tpu.memory_space<vmem>>, vector<2x16xf32>
    tpu.vector_store %arg12[%c0_25, %c160], %37 {strides = array<i32>} : memref<2x256xf32, #tpu.memory_space<vmem>>, vector<2x16xf32>,
    %39 = vector.extract_strided_slice %16 {offsets = [22, 0], sizes = [2, 16], strides = [1, 1]} : vector<32x16xf32> to vector<2x16xf32>
    %c0_26 = arith.constant 0 : index
    %c176 = arith.constant 176 : index
    %40 = vector.load %arg12[%c0_26, %c176] : memref<2x256xf32, #tpu.memory_space<vmem>>, vector<2x16xf32>
    tpu.vector_store %arg12[%c0_26, %c176], %39 {strides = array<i32>} : memref<2x256xf32, #tpu.memory_space<vmem>>, vector<2x16xf32>,
    %41 = vector.extract_strided_slice %16 {offsets = [24, 0], sizes = [2, 16], strides = [1, 1]} : vector<32x16xf32> to vector<2x16xf32>
    %c0_27 = arith.constant 0 : index
    %c192 = arith.constant 192 : index
    %42 = vector.load %arg12[%c0_27, %c192] : memref<2x256xf32, #tpu.memory_space<vmem>>, vector<2x16xf32>
    tpu.vector_store %arg12[%c0_27, %c192], %41 {strides = array<i32>} : memref<2x256xf32, #tpu.memory_space<vmem>>, vector<2x16xf32>,
    %43 = vector.extract_strided_slice %16 {offsets = [26, 0], sizes = [2, 16], strides = [1, 1]} : vector<32x16xf32> to vector<2x16xf32>
    %c0_28 = arith.constant 0 : index
    %c208 = arith.constant 208 : index
    %44 = vector.load %arg12[%c0_28, %c208] : memref<2x256xf32, #tpu.memory_space<vmem>>, vector<2x16xf32>
    tpu.vector_store %arg12[%c0_28, %c208], %43 {strides = array<i32>} : memref<2x256xf32, #tpu.memory_space<vmem>>, vector<2x16xf32>,
    %45 = vector.extract_strided_slice %16 {offsets = [28, 0], sizes = [2, 16], strides = [1, 1]} : vector<32x16xf32> to vector<2x16xf32>
    %c0_29 = arith.constant 0 : index
    %c224 = arith.constant 224 : index
    %46 = vector.load %arg12[%c0_29, %c224] : memref<2x256xf32, #tpu.memory_space<vmem>>, vector<2x16xf32>
    tpu.vector_store %arg12[%c0_29, %c224], %45 {strides = array<i32>} : memref<2x256xf32, #tpu.memory_space<vmem>>, vector<2x16xf32>,
    %47 = vector.extract_strided_slice %16 {offsets = [30, 0], sizes = [2, 16], strides = [1, 1]} : vector<32x16xf32> to vector<2x16xf32>
    %c0_30 = arith.constant 0 : index
    %c240 = arith.constant 240 : index
    %48 = vector.load %arg12[%c0_30, %c240] : memref<2x256xf32, #tpu.memory_space<vmem>>, vector<2x16xf32>
    tpu.vector_store %arg12[%c0_30, %c240], %47 {strides = array<i32>} : memref<2x256xf32, #tpu.memory_space<vmem>>, vector<2x16xf32>,
    %c0_31 = arith.constant 0 : index
    %c0_32 = arith.constant 0 : index
    %49 = vector.load %arg12[%c0_31, %c0_32] : memref<2x256xf32, #tpu.memory_space<vmem>>, vector<2x256xf32>
    %c0_33 = arith.constant 0 : index
    %c0_34 = arith.constant 0 : index
    %50 = vector.load %arg7[%c0_33, %c0_34] : memref<256x32xf32, #tpu.memory_space<vmem>>, vector<256x32xf32>
    %cst_35 = arith.constant dense<0.000000e+00> : vector<2x32xf32>
    %51 = tpu.matmul %49, %50, %cst_35 {dimension_numbers = #tpu.dot_dimension_numbers<[1], [0], [0], [1], [0, 0, 1, 1], [], []>} : vector<2x256xf32>, vector<256x32xf32>, vector<2x32xf32> -> vector<2x32xf32>
    %c0_36 = arith.constant 0 : index
    %c0_37 = arith.constant 0 : index
    %52 = vector.load %arg8[%c0_36, %c0_37] : memref<1x32xf32, #tpu.memory_space<vmem>>, vector<1x32xf32>
    %53 = vector.broadcast %52 : vector<1x32xf32> to vector<2x32xf32>
    %54 = arith.addf %51, %53 : vector<2x32xf32>
    %cst_38 = arith.constant 0.000000e+00 : f32
    %55 = vector.broadcast %cst_38 : f32 to vector<2x32xf32>
    %56 = arith.maximumf %54, %55 : vector<2x32xf32>
    %c0_39 = arith.constant 0 : index
    %c0_40 = arith.constant 0 : index
    %57 = vector.load %arg9[%c0_39, %c0_40] : memref<32x1xf32, #tpu.memory_space<vmem>>, vector<32x1xf32>
    %cst_41 = arith.constant dense<0.000000e+00> : vector<2x1xf32>
    %58 = tpu.matmul %56, %57, %cst_41 {dimension_numbers = #tpu.dot_dimension_numbers<[1], [0], [0], [1], [0, 0, 1, 1], [], []>} : vector<2x32xf32>, vector<32x1xf32>, vector<2x1xf32> -> vector<2x1xf32>
    %c0_42 = arith.constant 0 : index
    %c0_43 = arith.constant 0 : index
    %59 = vector.load %arg10[%c0_42, %c0_43] : memref<1x1xf32, #tpu.memory_space<vmem>>, vector<1x1xf32>
    %60 = vector.broadcast %59 : vector<1x1xf32> to vector<2x1xf32>
    %61 = arith.addf %58, %60 : vector<2x1xf32>
    %62 = arith.negf %61 : vector<2x1xf32>
    %63 = math.exp %62 : vector<2x1xf32>
    %cst_44 = arith.constant 1.000000e+00 : f32
    %64 = vector.broadcast %cst_44 : f32 to vector<2x1xf32>
    %65 = arith.addf %64, %63 : vector<2x1xf32>
    %66 = arith.divf %64, %65 : vector<2x1xf32>
    %c0_45 = arith.constant 0 : index
    %c0_46 = arith.constant 0 : index
    %67 = vector.load %arg11[%c0_45, %c0_46] : memref<2x1xf32, #tpu.memory_space<vmem>>, vector<2x1xf32>
    tpu.vector_store %arg11[%c0_45, %c0_46], %66 {strides = array<i32>} : memref<2x1xf32, #tpu.memory_space<vmem>>, vector<2x1xf32>,
    return
  }
  func.func @transform_0(%arg0: i32) -> (i32, i32) {
    %c0_i32 = arith.constant 0 : i32
    %c0_i32_0 = arith.constant 0 : i32
    %c0_i32_1 = arith.constant 0 : i32
    return %c0_i32, %c0_i32_0 : i32, i32
  }
  func.func @transform_1(%arg0: i32) -> (i32, i32) {
    %c0_i32 = arith.constant 0 : i32
    %c0_i32_0 = arith.constant 0 : i32
    %c0_i32_1 = arith.constant 0 : i32
    return %c0_i32, %c0_i32_0 : i32, i32
  }
  func.func @transform_2(%arg0: i32) -> (i32, i32) {
    %c0_i32 = arith.constant 0 : i32
    %c0_i32_0 = arith.constant 0 : i32
    %c0_i32_1 = arith.constant 0 : i32
    return %c0_i32, %c0_i32_0 : i32, i32
  }
  func.func @transform_3(%arg0: i32) -> (i32, i32) {
    %c0_i32 = arith.constant 0 : i32
    %c0_i32_0 = arith.constant 0 : i32
    %c0_i32_1 = arith.constant 0 : i32
    return %c0_i32, %c0_i32_0 : i32, i32
  }
  func.func @transform_4(%arg0: i32) -> (i32, i32) {
    %c0_i32 = arith.constant 0 : i32
    %c0_i32_0 = arith.constant 0 : i32
    %c0_i32_1 = arith.constant 0 : i32
    return %c0_i32, %c0_i32_0 : i32, i32
  }
  func.func @transform_5(%arg0: i32) -> (i32, i32) {
    %c0_i32 = arith.constant 0 : i32
    %c0_i32_0 = arith.constant 0 : i32
    %c0_i32_1 = arith.constant 0 : i32
    return %c0_i32, %c0_i32_0 : i32, i32
  }
  func.func @transform_6(%arg0: i32) -> (i32, i32) {
    %c0_i32 = arith.constant 0 : i32
    %c0_i32_0 = arith.constant 0 : i32
    %c0_i32_1 = arith.constant 0 : i32
    return %c0_i32, %c0_i32_0 : i32, i32
  }
  func.func @transform_7(%arg0: i32) -> (i32, i32) {
    %c0_i32 = arith.constant 0 : i32
    %c0_i32_0 = arith.constant 0 : i32
    %c0_i32_1 = arith.constant 0 : i32
    return %c0_i32, %c0_i32_0 : i32, i32
  }
  func.func @transform_8(%arg0: i32) -> (i32, i32) {
    %c0_i32 = arith.constant 0 : i32
    %c0_i32_0 = arith.constant 0 : i32
    %c0_i32_1 = arith.constant 0 : i32
    return %c0_i32, %c0_i32_0 : i32, i32
  }
  func.func @transform_9(%arg0: i32) -> (i32, i32) {
    %c0_i32 = arith.constant 0 : i32
    %c0_i32_0 = arith.constant 0 : i32
    %c0_i32_1 = arith.constant 0 : i32
    return %c0_i32, %c0_i32_0 : i32, i32
  }
  func.func @transform_10(%arg0: i32) -> (i32, i32) {
    %c0_i32 = arith.constant 0 : i32
    %c0_i32_0 = arith.constant 0 : i32
    %c0_i32_1 = arith.constant 0 : i32
    return %c0_i32, %c0_i32_0 : i32, i32
  }
}

</mosaic_0001>

<bundles_post_ra>
// kernel: ba_detection_net_forward.1
= control target key start
LH: loop header
LB: loop body
LE: loop exit
PB: predicated region body
PF: predicated region fallthrough
CT: control target
= control target key end

     0   :  { %v875_v0 = vmov 0.0|0.0   ;;  %vm77_vm0 = vcmask 556032   ;;  %v876_v44 = vmov 0.0   ;;  %vm90_vm1 = vcmask 1043456   ;;  %s879_s23 = smov 32   ;;  %s880_s27 = smov 80   ;;  %s1261_s2 = inlined_call_operand.vmem [shape: f32[196,72], index: 2, kind: input, shape index: {}]   ;;  %s1262_s0 = inlined_call_operand.vmem [shape: f32[32,196], index: 0, kind: input, shape index: {}]   ;;  %s1263_s4 = inlined_call_operand.vmem [shape: f32[72,16], index: 4, kind: input, shape index: {}]   ;;  %s1264_s3 = inlined_call_operand.vmem [shape: f32[1,72], index: 3, kind: input, shape index: {}]   ;;  %s1265_s1 = inlined_call_operand.vmem [shape: f32[32,72], index: 1, kind: input, shape index: {}]   ;;  %s1266_s5 = inlined_call_operand.vmem [shape: f32[1,16], index: 5, kind: input, shape index: {}]   ;;  %s1267_s6 = inlined_call_operand.vmem [shape: f32[256,32], index: 6, kind: input, shape index: {}]   ;;  %s1268_s8 = inlined_call_operand.vmem [shape: f32[32,1], index: 8, kind: input, shape index: {}]   ;;  %s1269_s9 = inlined_call_operand.<no memory space> [shape: f32[1,1], index: 9, kind: input, shape index: {}]   ;;  %s1270_s7 = inlined_call_operand.vmem [shape: f32[1,32], index: 7, kind: input, shape index: {}]   ;;  %s1271_s10 = inlined_call_operand.vmem [shape: f32[2,1], index: 10, kind: output, shape index: {}]  }
   0x1   :  { %770 = vmatprep.subr.bf16.mxu0 %v875_v0  ;;  %v45_v1 = vld [vmem:[%s1261_s2] sm:$0xff]  ;;  %v46_v2 = vld [vmem:[%s1261_s2 + $0x8] sm:$0xff]  ;;  %v47_v3 = vld [vmem:[%s1261_s2 + $0x10] sm:$0xff]  ;;  %vm207_vm2 = vcmask 588800   ;;  %vm309_vm3 = vcmask 123904   ;;  %s881_s14 = smov 16  }
   0x2   :  { %v771_v4 = vpack.c.bf16 %v46_v2, %v45_v1  ;;  %v48_v5 = vld [vmem:[%s1261_s2 + $0x18] sm:$0xff]  ;;  %v49_v7 = vld [vmem:[%s1261_s2 + $0x20] sm:$0xff]  ;;  %v50_v8 = vld [vmem:[%s1261_s2 + $0x28] sm:$0xff]  ;;  %s884_s19 = smov 112   ;;  %vm323_vm4 = vcmask 255104   ;;  %vm336_vm5 = vcmask 386304  }
   0x3   :  { %v774_v6 = vpack.c.bf16 %v48_v5, %v47_v3  ;;  %v777_v9 = vpack.c.bf16 %v50_v8, %v49_v7  ;;  %v51_v10 = vld [vmem:[%s1261_s2 + $0x30] sm:$0xff]  ;;  %v52_v11 = vld [vmem:[%s1261_s2 + $0x38] sm:$0xff]  ;;  %v38_v12 = vld [vmem:[%s1262_s0 + $0x8] sm:$0xff]  ;;  %vm342_vm6 = vcmask 517504   ;;  %vm355_vm7 = vcmask 648704  }
   0x4   :  { %772 = vmatpush1.bf16.msra.mxu0 %v771_v4  ;;  %668 = vmatprep.mubr.msk.f32.mxu0 %vm77_vm0, %v38_v12  ;;  %v780_v13 = vpack.c.bf16 %v52_v11, %v51_v10  ;;  %v191_v14 = vld [vmem:[%s1263_s4] sm:$0xff]  ;;  %v192_v15 = vld [vmem:[%s1263_s4 + $0x8] sm:$0xff]  ;;  %v193_v16 = vld [vmem:[%s1263_s4 + $0x10] sm:$0xff]  ;;  %vm361_vm8 = vcmask 779904   ;;  %vm374_vm9 = vcmask 911104   ;;  %vm380_vm10 = vcmask 1042304  }
   0x5   :  { %773 = vmatprep.subr.bf16.mxu0 %v875_v0  ;;  %v53_v17 = vld [vmem:[%s1261_s2 + $0x40] sm:$0xff]  ;;  %v54_v18 = vld [vmem:[%s1261_s2 + $0x48] sm:$0xff]  ;;  %v806_v19 = vpack.c.bf16 %v192_v15, %v191_v14  ;;  %v194_v20 = vld [vmem:[%s1263_s4 + $0x18] sm:$0xff]  ;;  %vm885_vm11 = vmmov 0   ;;  %vm580_vm12 = vcmask 261120   ;;  %vm660_vm13 = vcmask 1024  }
   0x6   :  { %v810_v21 = vpack.c.bf16 %v194_v20, %v193_v16  ;;  %v783_v22 = vpack.c.bf16 %v54_v18, %v53_v17  ;;  %v55_v23 = vld [vmem:[%s1261_s2 + $0x50] sm:$0xff]  ;;  %v56_v24 = vld [vmem:[%s1261_s2 + $0x58] sm:$0xff]  ;;  %v57_v26 = vld [vmem:[%s1261_s2 + $0x60] sm:$0xff] }
   0x7   :  { %807 = vmatprep.subr.bf16.mxu1 %v806_v19  ;;  %v786_v25 = vpack.c.bf16 %v56_v24, %v55_v23  ;;  %v58_v27 = vld [vmem:[%s1261_s2 + $0x68] sm:$0xff]  ;;  %v59_v29 = vld [vmem:[%s1261_s2 + $0x70] sm:$0xff]  ;;  %v60_v30 = vld [vmem:[%s1261_s2 + $0x78] sm:$0xff]  ;;  %v315_v24 = vlaneseq }
   0x8   :  { %775 = vmatpush1.bf16.msra.mxu0 %v774_v6  ;;  %809 = vmatpush3.bf16.msra.mxu1 %v806_v19  ;;  %v789_v28 = vpack.c.bf16 %v58_v27, %v57_v26  ;;  %v792_v31 = vpack.c.bf16 %v60_v30, %v59_v29  ;;  %v61_v32 = vld [vmem:[%s1261_s2 + $0x80] sm:$0xff]  ;;  %v62_v33 = vld [vmem:[%s1261_s2 + $0x88] sm:$0xff]  ;;  %v63_v35 = vld [vmem:[%s1261_s2 + $0x90] sm:$0xff] }
   0x9   :  { %776 = vmatprep.subr.bf16.mxu0 %v875_v0  ;;  %811 = vmatprep.subr.bf16.mxu1 %v810_v21  ;;  %v795_v34 = vpack.c.bf16 %v62_v33, %v61_v32  ;;  %v64_v36 = vld [vmem:[%s1261_s2 + $0x98] sm:$0xff]  ;;  %v65_v38 = vld [vmem:[%s1261_s2 + $0xa0] sm:$0xff]  ;;  %v66_v39 = vld [vmem:[%s1261_s2 + $0xa8] sm:$0xff]  ;;  %v316_v26 = vshrl.u32 %v315_v24, 7 }
   0xa   :  { %v798_v37 = vpack.c.bf16 %v64_v36, %v63_v35  ;;  %v801_v40 = vpack.c.bf16 %v66_v39, %v65_v38  ;;  %v67_v41 = vld [vmem:[%s1261_s2 + $0xb0] sm:$0xff]  ;;  %v68_v42 = vld [vmem:[%s1261_s2 + $0xb8] sm:$0xff]  ;;  %v69_v45 = vld [vmem:[%s1261_s2 + $0xc0] sm:$0xf]  ;;  %s882_s2 = smov 48  }
   0xb   :  { %v804_v43 = vpack.c.bf16 %v68_v42, %v67_v41  ;;  %v37_v46 = vld [vmem:[%s1262_s0] sm:$0xff]  ;;  %v40_v47 = vld [vmem:[%s1262_s0 + $0x18] sm:$0xff]  ;;  %v39_v48 = vld [vmem:[%s1262_s0 + $0x10] sm:$0xff] }
   0xc   :  { %778 = vmatpush1.bf16.msra.mxu0 %v777_v9  ;;  %813 = vmatpush3.bf16.msra.mxu1 %v810_v21  ;;  %v42_v49 = vld [vmem:[%s1262_s0 + $0x28] sm:$0xff]  ;;  %v41_v50 = vld [vmem:[%s1262_s0 + $0x20] sm:$0xff]  ;;  %v44_v51 = vld [vmem:[%s1262_s0 + $0x38] sm:$0xff] }
   0xd   :  { %779 = vmatprep.subr.bf16.mxu0 %v875_v0  ;;  %v43_v52 = vld [vmem:[%s1262_s0 + $0x30] sm:$0xff]  ;;  %v195_v53 = vld [vmem:[%s1263_s4 + $0x20] sm:$0xff]  ;;  %v196_v54 = vld [vmem:[%s1263_s4 + $0x28] sm:$0xff] }
   0xe   :  { %v814_v55 = vpack.c.bf16 %v196_v54, %v195_v53  ;;  %v197_v56 = vld [vmem:[%s1263_s4 + $0x30] sm:$0xff]  ;;  %v198_v57 = vld [vmem:[%s1263_s4 + $0x38] sm:$0xff]  ;;  %v199_v59 = vld [vmem:[%s1263_s4 + $0x40] sm:$0xff] }
   0xf   :  { %v818_v58 = vpack.c.bf16 %v198_v57, %v197_v56  ;;  %v666_v60 = vld [vmem:[%s1264_s3] ss:$0 sm:$0xff]  ;;  %v184_v7 = vld [vmem:[%s1265_s1 + $0x8] sm:$0xff]  ;;  %v186_v19 = vld [vmem:[%s1265_s1 + $0x18] sm:$0xff]  ;;  %s878_s3 = smov 64  }
  0x10   :  { %781 = vmatpush1.bf16.msra.mxu0 %v780_v13  ;;  %815 = vmatprep.subr.bf16.mxu1 %v814_v55  ;;  %v183_v1 = vld [vmem:[%s1265_s1] sm:$0xff]  ;;  %v185_v13 = vld [vmem:[%s1265_s1 + $0x10] sm:$0xff]  ;;  %v465_v29 = vld [vmem:[%s1267_s6 + $0x88] sm:$0xff] }
  0x11   :  { %782 = vmatprep.subr.bf16.mxu0 %v875_v0  ;;  %817 = vmatpush3.bf16.msra.mxu1 %v814_v55  ;;  %v672_v27 = vld [vmem:[%s1266_s5] ss:$0 sm:$0xff]  ;;  %v449_v32 = vld [vmem:[%s1267_s6 + $0x8] sm:$0xff]  ;;  %v466_v39 = vld [vmem:[%s1267_s6 + $0x90] sm:$0xff]  ;;  %s883_s5 = smov 96  }
  0x12   :  { %819 = vmatprep.subr.bf16.mxu1 %v818_v58  ;;  %v452_v53 = vld [vmem:[%s1267_s6 + $0x20] sm:$0xff]  ;;  %v453_v54 = vld [vmem:[%s1267_s6 + $0x28] sm:$0xff]  ;;  %v459_v24 = vld [vmem:[%s1267_s6 + $0x58] sm:$0xff] }
  0x13   :  { %v832_v57 = vpack.c.bf16 %v453_v54, %v452_v53 }
  0x14   :  { %784 = vmatpush1.bf16.msra.mxu0 %v783_v22  ;;  %v877_v22 = vmov 1983009808  }
  0x15   :  { %785 = vmatprep.subr.bf16.mxu0 %v875_v0  ;;  %821 = vmatpush3.bf16.msra.mxu1 %v818_v58  ;;  %v313_v23 = vunpack.c.l.s4 %v877_v22 }
  0x16   :  { %751 = vmatprep.subr.mxu1 %v199_v59 }
  0x18   :  { %787 = vmatpush1.bf16.msra.mxu0 %v786_v25  ;;  %v314_v25 = vunpack.c.0.s8 %v313_v23  ;;  %v458_v23 = vld [vmem:[%s1267_s6 + $0x50] sm:$0xff] }
  0x19   :  { %788 = vmatprep.subr.bf16.mxu0 %v875_v0  ;;  %752 = vmatpush3.msra.mxu1 %v199_v59 }
  0x1c   :  { %790 = vmatpush1.bf16.msra.mxu0 %v789_v28  ;;  %v464_v28 = vld [vmem:[%s1267_s6 + $0x80] sm:$0xff] }
  0x1d   :  { %791 = vmatprep.subr.bf16.mxu0 %v875_v0  ;;  %v822_v30 = vpack.c.bf16 %v465_v29, %v464_v28 }
  0x1f   :  { %823 = vmatprep.subr.bf16.mxu1 %v822_v30  ;;  %v476_v30 = vld [vmem:[%s1267_s6 + $0xe0] sm:$0xff] }
  0x20   :  { %793 = vmatpush1.bf16.msra.mxu0 %v792_v31  ;;  %v448_v31 = vld [vmem:[%s1267_s6] sm:$0xff] }
  0x21   :  { %794 = vmatprep.subr.bf16.mxu0 %v875_v0 }
  0x24   :  { %796 = vmatpush1.bf16.msra.mxu0 %v795_v34  ;;  %v824_v34 = vpack.c.bf16 %v449_v32, %v448_v31  ;;  %v477_v31 = vld [vmem:[%s1267_s6 + $0xe8] sm:$0xff]  ;;  %v460_v32 = vld [vmem:[%s1267_s6 + $0x60] sm:$0xff] }
  0x25   :  { %797 = vmatprep.subr.bf16.mxu0 %v875_v0 }
  0x28   :  { %799 = vmatpush1.bf16.msra.mxu0 %v798_v37  ;;  %v1118_v37 = vsub.s32 %v314_v25, %v316_v26  ;;  %v844_v25 = vpack.c.bf16 %v459_v24, %v458_v23 }
  0x29   :  { %800 = vmatprep.subr.bf16.mxu0 %v875_v0 }
  0x2c   :  { %802 = vmatpush1.bf16.msra.mxu0 %v801_v40  ;;  %v467_v40 = vld [vmem:[%s1267_s6 + $0x98] sm:$0xff] }
  0x2d   :  { %803 = vmatprep.subr.bf16.mxu0 %v875_v0  ;;  %v826_v42 = vpack.c.bf16 %v467_v40, %v466_v39  ;;  %v462_v39 = vld [vmem:[%s1267_s6 + $0x70] sm:$0xff]  ;;  %v463_v40 = vld [vmem:[%s1267_s6 + $0x78] sm:$0xff] }
  0x30   :  { %805 = vmatpush1.bf16.msra.mxu0 %v804_v43  ;;  %v450_v43 = vld [vmem:[%s1267_s6 + $0x10] sm:$0xff] }
  0x31   :  { %142 = vmatprep.subr.mxu0 %v876_v44 }
  0x34   :  { %667 = vmatpush1.msk.msra.mxu0 %vm90_vm1, %v69_v45  ;;  %v451_v45 = vld [vmem:[%s1267_s6 + $0x18] sm:$0xff] }
  0x35   :  { %159 = vmatmul.mubr.f32.vlgmr.msra.gmra.mrb[0].mxu0 %v37_v46 }
  0x36   :  { %669 = vmatprep.mubr.msk.f32.mxu0 %vm77_vm0, %v40_v47  ;;  %v828_v47 = vpack.c.bf16 %v451_v45, %v450_v43  ;;  %v852_v45 = vpack.c.bf16 %v463_v40, %v462_v39 }
  0x39   :  { %164 = vmatmul.mubr.f32.gmra.mrb[2].mxu0 %v39_v48 }
  0x3a   :  { %670 = vmatprep.mubr.msk.f32.mxu0 %vm77_vm0, %v42_v49 }
  0x3d   :  { %169 = vmatmul.mubr.f32.gmra.mrb[4].mxu0 %v41_v50  ;;  %v468_v50 = vld [vmem:[%s1267_s6 + $0xa0] sm:$0xff] }
  0x3e   :  { %671 = vmatprep.mubr.msk.f32.mxu0 %vm77_vm0, %v44_v51  ;;  %v469_v51 = vld [vmem:[%s1267_s6 + $0xa8] sm:$0xff] }
  0x41   :  { %174 = vmatmul.mubr.f32.gmra.mrb[6].mxu0 %v43_v52  ;;  %v830_v52 = vpack.c.bf16 %v469_v51, %v468_v50 }
 0x108   :  { %v160_v61 = vpop.f32.mrb[0].mxu0 }
 0x109   :  { %v161_v62 = vadd.f32 %v666_v60, %v160_v61  ;;  %v162_v63 = vpop.f32.mrb[1].mxu0 }
 0x10a   :  { %v470_v63 = vld [vmem:[%s1267_s6 + $0xb0] sm:$0xff] }
 0x10b   :  { %v179_v2 = vmax.f32 %v161_v62, 0.0 }
 0x10c   :  { %v165_v3 = vpop.f32.mrb[2].mxu0 }
 0x10d   :  { %v166_v4 = vadd.f32 %v666_v60, %v165_v3  ;;  %v167_v5 = vpop.f32.mrb[3].mxu0  ;;  %v187_v6 = vmul.f32 %v183_v1, %v179_v2  ;;  %v471_v1 = vld [vmem:[%s1267_s6 + $0xb8] sm:$0xff] }
 0x10e   :  { %v834_v3 = vpack.c.bf16 %v471_v1, %v470_v63  ;;  %v455_v5 = vld [vmem:[%s1267_s6 + $0x38] sm:$0xff]  ;;  %v569_v1 = vld [vmem:[%s1268_s8] sm:$0xff] }
 0x10f   :  { %v180_v8 = vmax.f32 %v166_v4, 0.0  ;;  %753 = vmatprep.mubr.msk.f32.mxu1 %vm207_vm2, %v187_v6  ;;  %v454_v4 = vld [vmem:[%s1267_s6 + $0x30] sm:$0xff] }
 0x110   :  { %v170_v9 = vpop.f32.mrb[4].mxu0 }
 0x111   :  { %v188_v10 = vmul.f32 %v184_v7, %v180_v8  ;;  %v171_v11 = vadd.f32 %v666_v60, %v170_v9  ;;  %v172_v12 = vpop.f32.mrb[5].mxu0  ;;  %v836_v7 = vpack.c.bf16 %v455_v5, %v454_v4  ;;  %v571_v4 = vld [vmem:[%s1268_s8 + $0x10] sm:$0xff]  ;;  %v572_v5 = vld [vmem:[%s1268_s8 + $0x18] sm:$0xff] }
 0x113   :  { %v181_v14 = vmax.f32 %v171_v11, 0.0  ;;  %754 = vmatmul.mubr.msk.f32.vlgmr.msra.gmra.mrb[0].mxu1 %vm207_vm2, %v188_v10  ;;  %v472_v10 = vld [vmem:[%s1267_s6 + $0xc0] sm:$0xff]  ;;  %v473_v11 = vld [vmem:[%s1267_s6 + $0xc8] sm:$0xff] }
 0x114   :  { %v175_v15 = vpop.f32.mrb[6].mxu0  ;;  %825 = vmatpush3.bf16.msra.mxu1 %v824_v34  ;;  %v838_v12 = vpack.c.bf16 %v473_v11, %v472_v10  ;;  %v461_v34 = vld [vmem:[%s1267_s6 + $0x68] sm:$0xff] }
 0x115   :  { %v189_v16 = vmul.f32 %v185_v13, %v181_v14  ;;  %v176_v17 = vadd.f32 %v666_v60, %v175_v15  ;;  %v177_v18 = vpop.f32.mrb[7].mxu0  ;;  %827 = vmatprep.subr.bf16.mxu1 %v826_v42  ;;  %v456_v13 = vld [vmem:[%s1267_s6 + $0x40] sm:$0xff]  ;;  %v457_v14 = vld [vmem:[%s1267_s6 + $0x48] sm:$0xff] }
 0x116   :  { %v840_v15 = vpack.c.bf16 %v457_v14, %v456_v13 }
 0x117   :  { %v182_v20 = vmax.f32 %v176_v17, 0.0  ;;  %756 = vmatprep.mubr.msk.f32.mxu1 %vm207_vm2, %v189_v16 }
 0x118   :  { %829 = vmatpush3.bf16.msra.mxu1 %v828_v47 }
 0x119   :  { %v190_v21 = vmul.f32 %v186_v19, %v182_v20  ;;  %831 = vmatprep.subr.bf16.mxu1 %v830_v52  ;;  %v474_v20 = vld [vmem:[%s1267_s6 + $0xd0] sm:$0xff] }
 0x11b   :  { %757 = vmatmul.mubr.msk.f32.gmra.mrb[2].mxu1 %vm207_vm2, %v190_v21  ;;  %v475_v21 = vld [vmem:[%s1267_s6 + $0xd8] sm:$0xff] }
 0x11c   :  { %833 = vmatpush3.bf16.msra.mxu1 %v832_v57  ;;  %v842_v22 = vpack.c.bf16 %v475_v21, %v474_v20 }
 0x11d   :  { %835 = vmatprep.subr.bf16.mxu1 %v834_v3 }
 0x120   :  { %837 = vmatpush3.bf16.msra.mxu1 %v836_v7  ;;  %v15_v7 = vstv %s1269_s9 }
 0x121   :  { %839 = vmatprep.subr.bf16.mxu1 %v838_v12  ;;  %16 = vst [vmem:[#allocation3] sm:$0x1] %v15_v7 }
 0x124   :  { %841 = vmatpush3.bf16.msra.mxu1 %v840_v15 }
 0x125   :  { %843 = vmatprep.subr.bf16.mxu1 %v842_v22 }
 0x128   :  { %845 = vmatpush3.bf16.msra.mxu1 %v844_v25  ;;  %v679_v13 = vld [vmem:[#allocation3] ss:$0 sm:$0xff] }
 0x1e6   :  { %v755_v33 = vpop.f32.mrb[0].mxu1 }
 0x1e7   :  { %v292_v35 = vadd.f32 %v755_v33, %v672_v27  ;;  %v286_v36 = vpop.f32.mrb[1].mxu1  ;;  %v846_v33 = vpack.c.bf16 %v477_v31, %v476_v30 }
 0x1e8   :  { %v287_v38 = vadd.f32 %v672_v27, %v286_v36  ;;  %v848_v36 = vpack.c.bf16 %v461_v34, %v460_v32 }
 0x1e9   :  { %v1126_v41 = vmax.f32 %v292_v35, 0.0  ;;  %v478_v35 = vld [vmem:[%s1267_s6 + $0xf0] sm:$0xff]  ;;  %847 = vmatprep.subr.bf16.mxu1 %v846_v33 }
 0x1ea   :  { %v305_v46 = vmax.f32 %v287_v38, 0.0  ;;  %v479_v38 = vld [vmem:[%s1267_s6 + $0xf8] sm:$0xff]  ;;  %849 = vmatpush3.bf16.msra.mxu1 %v848_v36 }
 0x1eb   :  { %v351_v48 = vrot.slane %v1126_v41, %v1118_v37  ;;  %v363_v26 = vcombine.high %v1126_v41, %v1126_v41  ;;  %v850_v43 = vpack.c.bf16 %v479_v38, %v478_v35 }
 0x1ec   :  { %v325_v49 = vcombine.high %v305_v46, %v305_v46  ;;  %310 = vst.msk [vmem:[#allocation2] sm:$0x3] %vm309_vm3, %v305_v46  ;;  %v318_v61 = vrot.slane %v305_v46, %v1118_v37 }
 0x1ed   :  { %352 = vrot.lane.b32.xlu0 %v351_v48, %s878_s3  ;;  %v357_v58 = vcombine.high %v351_v48, %v351_v48  ;;  %v370_v42 = vrot.slane %v363_v26, %v1118_v37  ;;  %851 = vmatprep.subr.bf16.mxu1 %v850_v43 }
 0x1ee   :  { %v758_v55 = vpop.f32.mrb[2].mxu1  ;;  %v332_v56 = vrot.slane %v325_v49, %v1118_v37  ;;  %v319_v9 = vcombine.high %v318_v61, %v318_v61  ;;  %853 = vmatpush3.bf16.msra.mxu1 %v852_v45 }
 0x1ef   :  { %v302_v59 = vadd.f32 %v758_v55, %v672_v27  ;;  %v296_v60 = vpop.f32.mrb[3].mxu1  ;;  %v376_v47 = vcombine.high %v370_v42, %v370_v42  ;;  %854 = vmatprep.subr.bf16.mxu1 %v875_v0 }
 0x1f0   :  { %v297_v62 = vadd.f32 %v672_v27, %v296_v60  ;;  %333 = vrot.lane.b32.xlu1 %v332_v56, %s879_s23  ;;  %v338_v17 = vcombine.high %v332_v56, %v332_v56 }
 0x1f1   :  { %v308_v2 = vmax.f32 %v302_v59, 0.0  ;;  %358 = vrot.lane.b32.xlu0 %v357_v58, %s880_s27 }
 0x1f2   :  { %v307_v6 = vmax.f32 %v297_v62, 0.0 }
 0x1f3   :  { %v420_v8 = vrot.slane %v308_v2, %v1118_v37  ;;  %v430_v16 = vcombine.high %v308_v2, %v308_v2  ;;  %v570_v2 = vld [vmem:[%s1268_s8 + $0x8] sm:$0xff] }
 0x1f4   :  { %382 = vst.msk [vmem:[#allocation2 + $0x2] sm:$0x3] %vm309_vm3, %v307_v6  ;;  %v390_v19 = vrot.slane %v307_v6, %v1118_v37  ;;  %v396_v27 = vcombine.high %v307_v6, %v307_v6  ;;  %v855_v3 = vpack.c.bf16 %v570_v2, %v569_v1  ;;  %v858_v6 = vpack.c.bf16 %v572_v5, %v571_v4 }
 0x1f5   :  { %421 = vrot.lane.b32.xlu1 %v420_v8, %s878_s3  ;;  %320 = vrot.lane.b32.xlu0 %v319_v9, %s881_s14  ;;  %v425_v18 = vcombine.high %v420_v8, %v420_v8  ;;  %v437_v28 = vrot.slane %v430_v16, %v1118_v37 }
 0x1f6   :  { %v391_v29 = vcombine.high %v390_v19, %v390_v19  ;;  %v403_v41 = vrot.slane %v396_v27, %v1118_v37 }
 0x1f7   :  { %v442_v48 = vcombine.high %v437_v28, %v437_v28 }
 0x1f8   :  { %v408_v46 = vcombine.high %v403_v41, %v403_v41 }
 0x1f9   :  { %426 = vrot.lane.b32.xlu1 %v425_v18, %s880_s27  ;;  %339 = vrot.lane.b32.xlu0 %v338_v17, %s882_s2 }
 0x1fd   :  { %438 = vrot.lane.b32.xlu1 %v437_v28, %s883_s5  ;;  %392 = vrot.lane.b32.xlu0 %v391_v29, %s881_s14 }
 0x201   :  { %404 = vrot.lane.b32.xlu1 %v403_v41, %s879_s23  ;;  %371 = vrot.lane.b32.xlu0 %v370_v42, %s883_s5 }
 0x205   :  { %409 = vrot.lane.b32.xlu1 %v408_v46, %s882_s2  ;;  %377 = vrot.lane.b32.xlu0 %v376_v47, %s884_s19 }
 0x209   :  { %443 = vrot.lane.b32.xlu1 %v442_v48, %s884_s19 }
 0x25f   :  { %v353_v37 = vpop.permute.xlu0 %352 }
 0x262   :  { %v334_v49 = vpop.permute.xlu1 %333 }
 0x263   :  { %v359_v50 = vpop.permute.xlu0 %358 }
 0x267   :  { %v422_v51 = vpop.permute.xlu1 %421  ;;  %v321_v52 = vpop.permute.xlu0 %320 }
 0x268   :  { %324 = vst.msk [vmem:[#allocation2] sm:$0x3] %vm323_vm4, %v321_v52 }
 0x269   :  { %337 = vst.msk [vmem:[#allocation2] sm:$0x3] %vm336_vm5, %v334_v49 }
 0x26b   :  { %v427_v53 = vpop.permute.xlu1 %426  ;;  %v340_v54 = vpop.permute.xlu0 %339 }
 0x26c   :  { %343 = vst.msk [vmem:[#allocation2] sm:$0x3] %vm342_vm6, %v340_v54 }
 0x26d   :  { %356 = vst.msk [vmem:[#allocation2] sm:$0x3] %vm355_vm7, %v353_v37 }
 0x26e   :  { %362 = vst.msk [vmem:[#allocation2] sm:$0x3] %vm361_vm8, %v359_v50 }
 0x26f   :  { %v439_v55 = vpop.permute.xlu1 %438  ;;  %v393_v56 = vpop.permute.xlu0 %392 }
 0x270   :  { %395 = vst.msk [vmem:[#allocation2 + $0x2] sm:$0x3] %vm323_vm4, %v393_v56 }
 0x273   :  { %v405_v57 = vpop.permute.xlu1 %404  ;;  %v372_v58 = vpop.permute.xlu0 %371 }
 0x274   :  { %407 = vst.msk [vmem:[#allocation2 + $0x2] sm:$0x3] %vm336_vm5, %v405_v57 }
 0x275   :  { %375 = vst.msk [vmem:[#allocation2] sm:$0x3] %vm374_vm9, %v372_v58 }
 0x277   :  { %v410_v59 = vpop.permute.xlu1 %409  ;;  %v378_v60 = vpop.permute.xlu0 %377 }
 0x278   :  { %412 = vst.msk [vmem:[#allocation2 + $0x2] sm:$0x3] %vm342_vm6, %v410_v59 }
 0x279   :  { %381 = vst.msk [vmem:[#allocation2] sm:$0x3] %vm380_vm10, %v378_v60 }
 0x27a   :  { %424 = vst.msk [vmem:[#allocation2 + $0x2] sm:$0x3] %vm355_vm7, %v422_v51 }
 0x27b   :  { %429 = vst.msk [vmem:[#allocation2 + $0x2] sm:$0x3] %vm361_vm8, %v427_v53  ;;  %v444_v61 = vpop.permute.xlu1 %443 }
 0x27c   :  { %441 = vst.msk [vmem:[#allocation2 + $0x2] sm:$0x3] %vm374_vm9, %v439_v55 }
 0x27d   :  { %446 = vst.msk [vmem:[#allocation2 + $0x2] sm:$0x3] %vm380_vm10, %v444_v61 }
 0x284   :  { %v678_v62 = vld.sshfl [vmem:[#allocation2] sm:$0x33 pattern:$0x76325410] }
 0x285   :  { %v495_v63 = vcombine.high %v678_v62, %v678_v62 }
 0x287   :  { %562 = vmatprep.mubr.f32.mxu1 %v495_v63 }
 0x288   :  { %563 = vmatmul.mubr.f32.vlgmr.msra.gmra.mrb[4].mxu1 %v678_v62 }
 0x289   :  { %856 = vmatpush3.bf16.msra.mxu1 %v855_v3  ;;  %767 = vmatprep.mubr.msk.f32.mxu1 %vm885_vm11, %v876_v44 }
 0x28a   :  { %857 = vmatprep.subr.bf16.mxu1 %v875_v0  ;;  %v677_v0 = vld [vmem:[%s1270_s7] ss:$0 sm:$0xff] }
 0x28d   :  { %859 = vmatpush3.bf16.msra.mxu1 %v858_v6 }
 0x35b   :  { %v727_v8 = vpop.f32.mrb[4].mxu1 }
 0x35c   :  { %v728_v9 = vpop.f32.mrb[5].mxu1 }
 0x35d   :  { %v729_v10 = vadd.f32 %v728_v9, %v727_v8 }
 0x35f   :  { %v565_v11 = vadd.f32 %v729_v10, %v677_v0 }
 0x361   :  { %v568_v12 = vmax.f32 %v565_v11, 0.0 }
 0x363   :  { %768 = vmatmul.mubr.msk.f32.vlgmr.msra.gmra.mrb[6].mxu1 %vm580_vm12, %v568_v12 }
 0x436   :  { %v650_v14 = vpop.f32.mrb[6].mxu1 }
 0x437   :  { %v651_v15 = vadd.f32 %v679_v13, %v650_v14  ;;  %v769_v44 = vpop.f32.mrb[7].mxu1 }
 0x439   :  { %v681_v16 = vmul.f32 -1.442695, %v651_v15 }
 0x43b   :  { %871 = vpow2.f32 %v681_v16 }
 0x445   :  { %v872_v17 = vpop.eup %871 }
 0x446   :  { %v657_v18 = vadd.f32 1.0, %v872_v17 }
 0x448   :  { %873 = vrcp.f32 %v657_v18 }
 0x452   :  { %v874_v19 = vpop.eup %873 }
 0x453   :  { %661 = vst.msk [vmem:[%s1271_s10] sm:$0x3] %vm660_vm13, %v874_v19 }

</bundles_post_ra>
